<compile_context>
chip_gen: v5e
topology: v5e:2x2
jax: 0.10.0
libtpu: 0.0.40
codegen_flags: <defaults>
</compile_context>

<pallas_src>
import math

import jax
import jax.numpy as jnp
from jax.experimental import pallas as pl
from jax.experimental.pallas import tpu as pltpu

_EPS = 1e-12           # F.normalize default eps
_INV_EPS = 1.0 / _EPS  # scale = 1 / max(||v||, eps) = min(rsqrt(||v||^2), 1/eps)


def _arcmargin_kernel(x_ref, w_ref, rx_ref, rw_ref, o_ref):
    # x_ref:  (tm, D)  raw feature rows
    # w_ref:  (tn, D)  raw weight rows
    # rx_ref: (tm, 1)  f32  1 / max(||x_row||, eps)   (precomputed outside)
    # rw_ref: (1, tn)  f32  1 / max(||w_row||, eps)   (precomputed outside)
    # o_ref:  (tm, tn) output tile
    #
    # Raw-dtype matmul on the MXU, contracting D of both operands directly
    # (A @ B^T handled natively by the MXU load path, no in-kernel transpose).
    acc = jax.lax.dot_general(
        x_ref[...], w_ref[...],
        dimension_numbers=(((1,), (1,)), ((), ())),
        preferred_element_type=jnp.float32,
    )                                                       # (tm, tn) f32
    # Scale the small output tile instead of normalizing the big operands.
    o_ref[...] = (acc * rx_ref[...] * rw_ref[...]).astype(o_ref.dtype)


def _round_up(x, m):
    return ((x + m - 1) // m) * m


def _inv_norm(x):
    # 1 / max(||row||, eps) == min(rsqrt(||row||^2), 1/eps); rsqrt(0)=inf is
    # clamped, so zero rows yield 0 after scaling (matches x / 1e-12 == 0).
    x32 = x.astype(jnp.float32)
    sq = jnp.sum(x32 * x32, axis=-1, keepdims=True)
    return jnp.minimum(jax.lax.rsqrt(sq), _INV_EPS)


def _vmem_sizes():
    """(vmem_limit_bytes, tile budget) — generation aware, conservative fallback."""
    cap = None
    try:
        cap = int(pltpu.get_tpu_info().vmem_capacity_bytes)
    except Exception:
        cap = None
    if not cap or cap <= 0:
        cap = 64 * 1024 * 1024  # v7x-safe fallback
    vmem_limit = min((cap * 3) // 4, 128 * 1024 * 1024)   # leave headroom
    budget = (vmem_limit * 2) // 3                         # double-buffer slack
    return vmem_limit, budget


def _select_tiles(B_pad, N_pad, D, x_bytes, w_bytes, out_bytes, budget):
    def need(tm_c, tn_c):
        return (2 * tm_c * D * x_bytes            # double-buffered features block
                + 2 * tn_c * D * w_bytes          # double-buffered weight tiles
                + 2 * tm_c * tn_c * out_bytes     # double-buffered output tiles
                + tm_c * tn_c * 4                 # f32 accumulator temporary
                + 2 * tm_c * 4 + 2 * tn_c * 4)    # inverse-norm tiles

    # M tile: keep the whole batch resident if it fits (single weight pass
    # over HBM), otherwise the largest 128-multiple dividing the padded batch.
    tm_cands = [B_pad] + [c for c in (1024, 512, 256, 128)
                          if c < B_pad and B_pad % c == 0]
    tm = tm_cands[-1]
    for c in tm_cands:
        if need(c, 128) <= budget:
            tm = c
            break

    # N tile: largest 128-multiple dividing N_pad that fits the budget.
    if N_pad % 128 != 0:        # tiny N (< 128): one full block
        return tm, N_pad
    tn = 128
    for c in (4096, 2048, 1024, 512, 256):
        if N_pad % c == 0 and need(tm, c) <= budget:
            tn = c
            break
    return tm, tn


def arc_margin_product(features, weight):
    """cosine = normalize(features) @ normalize(weight).T via a Pallas TPU kernel."""
    B, D = features.shape
    N, Dw = weight.shape
    assert D == Dw, "in_features mismatch"

    x_bytes = features.dtype.itemsize
    w_bytes = weight.dtype.itemsize
    out_bytes = features.dtype.itemsize

    # Pad ragged dims to 128-multiples (padded rows/cols are zero → cosine 0,
    # sliced off below).  B <= 256 stays a single resident full-dim block.
    B_pad = B if B <= 256 else _round_up(B, 128)
    N_pad = N if N <= 128 else _round_up(N, 128)
    x_p = features if B_pad == B else jnp.pad(features, ((0, B_pad - B), (0, 0)))
    w_p = weight if N_pad == N else jnp.pad(weight, ((0, N_pad - N), (0, 0)))

    # Inverse norms precomputed in plain XLA (only 4*(B+N) extra HBM bytes).
    inv_x = _inv_norm(x_p)                      # (B_pad, 1) f32
    inv_w = _inv_norm(w_p).reshape(1, N_pad)    # (1, N_pad) f32

    vmem_limit, budget = _vmem_sizes()
    tm, tn = _select_tiles(B_pad, N_pad, D, x_bytes, w_bytes, out_bytes, budget)
    grid = (B_pad // tm, N_pad // tn)

    cost = pl.CostEstimate(
        flops=2 * B_pad * N_pad * D,
        bytes_accessed=(grid[0] * N_pad * D * w_bytes     # weight stream per row block
                        + B_pad * D * x_bytes
                        + B_pad * N_pad * out_bytes
                        + 4 * (B_pad + N_pad)),
        transcendentals=0,
    )

    out = pl.pallas_call(
        _arcmargin_kernel,
        out_shape=jax.ShapeDtypeStruct((B_pad, N_pad), features.dtype),
        grid_spec=pltpu.PrefetchScalarGridSpec(
            num_scalar_prefetch=0,
            grid=grid,
            in_specs=[
                pl.BlockSpec((tm, D), lambda i, j: (i, 0)),   # features row block
                pl.BlockSpec((tn, D), lambda i, j: (j, 0)),   # weight row tile
                pl.BlockSpec((tm, 1), lambda i, j: (i, 0)),   # 1/max(||x||,eps)
                pl.BlockSpec((1, tn), lambda i, j: (0, j)),   # 1/max(||w||,eps)
            ],
            out_specs=pl.BlockSpec((tm, tn), lambda i, j: (i, j)),
        ),
        compiler_params=pltpu.CompilerParams(
            # No cross-step state: both axes independent → v7x uses both TCs.
            dimension_semantics=("parallel", "parallel"),
            vmem_limit_bytes=vmem_limit,
        ),
        cost_estimate=cost,
    )(x_p, w_p, inv_x, inv_w)

    if B_pad != B or N_pad != N:
        out = out[:B, :N]
    return out


def xavier_uniform(key, out_features, in_features, dtype=jnp.float32):
    # nn.init.xavier_uniform_ on a (out_features, in_features) tensor.
    bound = math.sqrt(6.0 / (in_features + out_features))
    return jax.random.uniform(
        key, (out_features, in_features), dtype=dtype, minval=-bound, maxval=bound
    )


def _reference(features, weight):
    def l2norm(x):
        return x / jnp.maximum(jnp.linalg.norm(x, axis=-1, keepdims=True), _EPS)
    return l2norm(features.astype(jnp.float32)) @ l2norm(weight.astype(jnp.float32)).T


if __name__ == "__main__":
    B = 8
    IN_FEATURES = 128
    OUT_FEATURES = 256

    key = jax.random.PRNGKey(0)
    k_feat, k_w, k_feat2, k_w2 = jax.random.split(key, 4)

    features = jax.random.normal(k_feat, (B, IN_FEATURES), dtype=jnp.float32)
    weight = xavier_uniform(k_w, OUT_FEATURES, IN_FEATURES)

    # f32 path
    cosine = jax.block_until_ready(arc_margin_product(features, weight))
    ref = _reference(features, weight)
    assert cosine.shape == (B, OUT_FEATURES)
    assert jnp.allclose(cosine.astype(jnp.float32), ref, atol=1e-4, rtol=1e-4)

    # bf16 fast path (native-dtype MXU matmul, f32 norm scales / accumulation).
    # NOTE: op order differs from the reference (raw-bf16 matmul then f32
    # scaling vs normalize-in-f32 then matmul); equal at bf16 tolerance.
    f_bf16 = features.astype(jnp.bfloat16)
    w_bf16 = weight.astype(jnp.bfloat16)
    cosine_bf16 = jax.block_until_ready(arc_margin_product(f_bf16, w_bf16))
    ref_bf16 = _reference(f_bf16, w_bf16)
    assert cosine_bf16.shape == (B, OUT_FEATURES)
    assert jnp.allclose(cosine_bf16.astype(jnp.float32), ref_bf16, atol=5e-2, rtol=5e-2)

    # Ragged out_features (exercises the N-padding path).
    features2 = jax.random.normal(k_feat2, (10, IN_FEATURES), dtype=jnp.float32)
    weight2 = xavier_uniform(k_w2, 200, IN_FEATURES)
    cosine2 = jax.block_until_ready(arc_margin_product(features2, weight2))
    ref2 = _reference(features2, weight2)
    assert cosine2.shape == (10, 200)
    assert jnp.allclose(cosine2, ref2, atol=1e-4, rtol=1e-4)

    print("KERNEL_OK")
</pallas_src>

<mosaic_0001>
module attributes {stable_mosaic.version = 11 : i64} {
  func.func @_arcmargin_kernel(%arg0: i32, %arg1: i32, %arg2: memref<8x128xf32, #tpu.memory_space<vmem>>, %arg3: memref<256x128xf32, #tpu.memory_space<vmem>>, %arg4: memref<8x1xf32, #tpu.memory_space<vmem>>, %arg5: memref<1x256xf32, #tpu.memory_space<vmem>>, %arg6: memref<8x256xf32, #tpu.memory_space<vmem>>) attributes {dimension_semantics = [#tpu.dimension_semantics<parallel>, #tpu.dimension_semantics<parallel>], iteration_bounds = array<i64: 1, 1>, scalar_prefetch = 0 : i64, scratch_operands = 0 : i64, tpu.core_type = #tpu.core_type<tc>, window_params = [{transform_indices = @transform_0, window_bounds = array<i64: 8, 128>}, {transform_indices = @transform_1, window_bounds = array<i64: 256, 128>}, {transform_indices = @transform_2, window_bounds = array<i64: 8, 1>}, {transform_indices = @transform_3, window_bounds = array<i64: 1, 256>}, {transform_indices = @transform_4, window_bounds = array<i64: 8, 256>}]} {
    %c0 = arith.constant 0 : index
    %c0_0 = arith.constant 0 : index
    %0 = vector.load %arg2[%c0, %c0_0] : memref<8x128xf32, #tpu.memory_space<vmem>>, vector<8x128xf32>
    %c0_1 = arith.constant 0 : index
    %c0_2 = arith.constant 0 : index
    %1 = vector.load %arg3[%c0_1, %c0_2] : memref<256x128xf32, #tpu.memory_space<vmem>>, vector<256x128xf32>
    %cst = arith.constant dense<0.000000e+00> : vector<8x256xf32>
    %2 = tpu.matmul %0, %1, %cst {dimension_numbers = #tpu.dot_dimension_numbers<[1], [1], [0], [0], [0, 0, 1, 0], [], []>} : vector<8x128xf32>, vector<256x128xf32>, vector<8x256xf32> -> vector<8x256xf32>
    %c0_3 = arith.constant 0 : index
    %c0_4 = arith.constant 0 : index
    %3 = vector.load %arg4[%c0_3, %c0_4] : memref<8x1xf32, #tpu.memory_space<vmem>>, vector<8x1xf32>
    %4 = vector.broadcast %3 : vector<8x1xf32> to vector<8x256xf32>
    %5 = arith.mulf %2, %4 : vector<8x256xf32>
    %c0_5 = arith.constant 0 : index
    %c0_6 = arith.constant 0 : index
    %6 = vector.load %arg5[%c0_5, %c0_6] : memref<1x256xf32, #tpu.memory_space<vmem>>, vector<1x256xf32>
    %7 = vector.broadcast %6 : vector<1x256xf32> to vector<8x256xf32>
    %8 = arith.mulf %5, %7 : vector<8x256xf32>
    %c0_7 = arith.constant 0 : index
    %c0_8 = arith.constant 0 : index
    %9 = vector.load %arg6[%c0_7, %c0_8] : memref<8x256xf32, #tpu.memory_space<vmem>>, vector<8x256xf32>
    tpu.vector_store %arg6[%c0_7, %c0_8], %8 {strides = array<i32>} : memref<8x256xf32, #tpu.memory_space<vmem>>, vector<8x256xf32>,
    return
  }
  func.func @transform_0(%arg0: i32, %arg1: i32) -> (i32, i32) {
    %c0_i32 = arith.constant 0 : i32
    %c0_i32_0 = arith.constant 0 : i32
    return %arg0, %c0_i32 : i32, i32
  }
  func.func @transform_1(%arg0: i32, %arg1: i32) -> (i32, i32) {
    %c0_i32 = arith.constant 0 : i32
    %c0_i32_0 = arith.constant 0 : i32
    return %arg1, %c0_i32 : i32, i32
  }
  func.func @transform_2(%arg0: i32, %arg1: i32) -> (i32, i32) {
    %c0_i32 = arith.constant 0 : i32
    %c0_i32_0 = arith.constant 0 : i32
    return %arg0, %c0_i32 : i32, i32
  }
  func.func @transform_3(%arg0: i32, %arg1: i32) -> (i32, i32) {
    %c0_i32 = arith.constant 0 : i32
    %c0_i32_0 = arith.constant 0 : i32
    return %c0_i32, %arg1 : i32, i32
  }
  func.func @transform_4(%arg0: i32, %arg1: i32) -> (i32, i32) {
    %c0_i32 = arith.constant 0 : i32
    return %arg0, %arg1 : i32, i32
  }
}

</mosaic_0001>

<bundles_post_ra>
// kernel: tpu_custom_call.1
= control target key start
LH: loop header
LB: loop body
LE: loop exit
PB: predicated region body
PF: predicated region fallthrough
CT: control target
= control target key end

     0   :  { %9 = vsyncpa [#allocation3], 0  ;;  %s245_s0 = inlined_call_operand.vmem [shape: f32[8,128], index: 0, kind: input, shape index: {}]   ;;  %s246_s1 = inlined_call_operand.hbm [shape: f32[256,128], index: 1, kind: input, shape index: {}]   ;;  %s247_s2 = inlined_call_operand.vmem [shape: f32[8,1], index: 2, kind: input, shape index: {}]   ;;  %s248_s3 = inlined_call_operand.vmem [shape: f32[1,256], index: 3, kind: input, shape index: {}]   ;;  %s249_s4 = inlined_call_operand.hbm [shape: f32[8,256], index: 4, kind: output, shape index: {}]  }
   0x1   :  { %10 = vsyncpa [#allocation4], 0  ;;  %s17_s17 = sshll.u32 %s246_s1, 4  ;;  %s200_s18 = smov [#allocation2]   ;;  %s18_s17 = int_to_ptr.hbm [resolvable:$true] %s17_s17 }
   0x2   :  { %s19_s19 = sshll.u32 %s200_s18, 4  ;;  %s201_s20 = smov 128   ;;  %s20_s19 = int_to_ptr.vmem [resolvable:$true] %s19_s19 }
   0x3   :  { %s202_s21 = smov 8  }
   0x4   :  { %25 = dma.hbm_to_vmem [thread:$0]  %s18_s17, 4096, %s20_s19, [#allocation3], %s201_s20, %s201_s20, %s202_s21  }
   0x5   :  { %196 = dma.done.wait [#allocation3], 4096  }
   0x6   :  { %197 = vsyncadd [#allocation3], 4294963200  ;;  %v50_v0 = vld [vmem:[#allocation2 + $0x78] sm:$0xff]  ;;  %v49_v2 = vld [vmem:[#allocation2 + $0x70] sm:$0xff]  ;;  %v203_v21 = vmov 0   ;;  %s204_s26 = smov [#allocation5]  }
   0x7   :  { %v66_v1 = vld [vmem:[#allocation2 + $0xf8] sm:$0xff]  ;;  %67 = vmatpush.xpose.msra.mxu0 %v50_v0  ;;  %v65_v3 = vld [vmem:[#allocation2 + $0xf0] sm:$0xff]  ;;  %v48_v4 = vld [vmem:[#allocation2 + $0x68] sm:$0xff]  ;;  %147 = vset.pattern.permute.xlu0 %v203_v21  ;;  %s130_s27 = sshll.u32 %s204_s26, 4  ;;  %s132_s30 = sshll.u32 %s249_s4, 4  ;;  %s131_s27 = int_to_ptr.vmem [resolvable:$true] %s130_s27  ;;  %s133_s30 = int_to_ptr.hbm [resolvable:$true] %s132_s30 }
   0x8   :  { %87 = vmatpush.xpose.msra.mxu1 %v66_v1  ;;  %v64_v5 = vld [vmem:[#allocation2 + $0xe8] sm:$0xff]  ;;  %v47_v6 = vld [vmem:[#allocation2 + $0x60] sm:$0xff]  ;;  %v46_v8 = vld [vmem:[#allocation2 + $0x58] sm:$0xff] }
   0x9   :  { %v63_v7 = vld [vmem:[#allocation2 + $0xe0] sm:$0xff]  ;;  %v62_v9 = vld [vmem:[#allocation2 + $0xd8] sm:$0xff]  ;;  %v45_v10 = vld [vmem:[#allocation2 + $0x50] sm:$0xff] }
   0xa   :  { %v61_v11 = vld [vmem:[#allocation2 + $0xd0] sm:$0xff]  ;;  %v44_v12 = vld [vmem:[#allocation2 + $0x48] sm:$0xff]  ;;  %v43_v14 = vld [vmem:[#allocation2 + $0x40] sm:$0xff] }
   0xb   :  { %68 = vmatpush.xpose.msra.mxu0 %v49_v2  ;;  %v60_v13 = vld [vmem:[#allocation2 + $0xc8] sm:$0xff]  ;;  %v59_v15 = vld [vmem:[#allocation2 + $0xc0] sm:$0xff]  ;;  %v42_v16 = vld [vmem:[#allocation2 + $0x38] sm:$0xff] }
   0xc   :  { %88 = vmatpush.xpose.msra.mxu1 %v65_v3  ;;  %v58_v17 = vld [vmem:[#allocation2 + $0xb8] sm:$0xff]  ;;  %v107_v18 = vld [vmem:[%s247_s2] sm:$0xff]  ;;  %v41_v19 = vld [vmem:[#allocation2 + $0x30] sm:$0xff] }
   0xd   :  { %v57_v20 = vld [vmem:[#allocation2 + $0xb0] sm:$0xff]  ;;  %110 = vperm.xlu0 %147, %v107_v18   ;;  %v40_v22 = vld [vmem:[#allocation2 + $0x28] sm:$0xff]  ;;  %v39_v24 = vld [vmem:[#allocation2 + $0x20] sm:$0xff] }
   0xe   :  { %v56_v23 = vld [vmem:[#allocation2 + $0xa8] sm:$0xff]  ;;  %v55_v25 = vld [vmem:[#allocation2 + $0xa0] sm:$0xff]  ;;  %v38_v26 = vld [vmem:[#allocation2 + $0x18] sm:$0xff] }
   0xf   :  { %69 = vmatpush.xpose.msra.mxu0 %v48_v4  ;;  %v54_v27 = vld [vmem:[#allocation2 + $0x98] sm:$0xff]  ;;  %v37_v28 = vld [vmem:[#allocation2 + $0x10] sm:$0xff]  ;;  %v36_v30 = vld [vmem:[#allocation2 + $0x8] sm:$0xff] }
  0x10   :  { %89 = vmatpush.xpose.msra.mxu1 %v64_v5  ;;  %v53_v29 = vld [vmem:[#allocation2 + $0x90] sm:$0xff]  ;;  %v52_v31 = vld [vmem:[#allocation2 + $0x88] sm:$0xff]  ;;  %v35_v32 = vld [vmem:[#allocation2] sm:$0xff] }
  0x11   :  { %v51_v33 = vld [vmem:[#allocation2 + $0x80] sm:$0xff] }
  0x12   :  { %v34_v34 = vld [vmem:[%s245_s0] sm:$0xff] }
  0x13   :  { %70 = vmatpush.xpose.msra.mxu0 %v47_v6  ;;  %v115_v35 = vld [vmem:[%s248_s3] sm:$0x3] }
  0x14   :  { %90 = vmatpush.xpose.msra.mxu1 %v63_v7  ;;  %v117_v37 = vperm.slane %v115_v35, 0  ;;  %v118_v38 = vperm.slane %v115_v35, 1 }
  0x17   :  { %71 = vmatpush.xpose.msra.mxu0 %v46_v8 }
  0x18   :  { %91 = vmatpush.xpose.msra.mxu1 %v62_v9 }
  0x1b   :  { %72 = vmatpush.xpose.msra.mxu0 %v45_v10 }
  0x1c   :  { %92 = vmatpush.xpose.msra.mxu1 %v61_v11 }
  0x1f   :  { %73 = vmatpush.xpose.msra.mxu0 %v44_v12 }
  0x20   :  { %93 = vmatpush.xpose.msra.mxu1 %v60_v13 }
  0x23   :  { %74 = vmatpush.xpose.msra.mxu0 %v43_v14 }
  0x24   :  { %94 = vmatpush.xpose.msra.mxu1 %v59_v15 }
  0x27   :  { %75 = vmatpush.xpose.msra.mxu0 %v42_v16 }
  0x28   :  { %95 = vmatpush.xpose.msra.mxu1 %v58_v17 }
  0x2b   :  { %76 = vmatpush.xpose.msra.mxu0 %v41_v19 }
  0x2c   :  { %96 = vmatpush.xpose.msra.mxu1 %v57_v20 }
  0x2f   :  { %77 = vmatpush.xpose.msra.mxu0 %v40_v22 }
  0x30   :  { %97 = vmatpush.xpose.msra.mxu1 %v56_v23 }
  0x33   :  { %78 = vmatpush.xpose.msra.mxu0 %v39_v24 }
  0x34   :  { %98 = vmatpush.xpose.msra.mxu1 %v55_v25 }
  0x37   :  { %79 = vmatpush.xpose.msra.mxu0 %v38_v26 }
  0x38   :  { %99 = vmatpush.xpose.msra.mxu1 %v54_v27 }
  0x3b   :  { %80 = vmatpush.xpose.msra.mxu0 %v37_v28 }
  0x3c   :  { %100 = vmatpush.xpose.msra.mxu1 %v53_v29 }
  0x3f   :  { %81 = vmatpush.xpose.msra.mxu0 %v36_v30 }
  0x40   :  { %101 = vmatpush.xpose.msra.mxu1 %v52_v31 }
  0x43   :  { %82 = vmatpush.xpose.msra.mxu0 %v35_v32 }
  0x44   :  { %102 = vmatpush.xpose.msra.mxu1 %v51_v33 }
  0x46   :  { %83 = vmatmul.f32.vlgmr.msra.gmra.mxu0 %v34_v34 }
  0x47   :  { %103 = vmatmul.f32.vlgmr.msra.gmra.mxu1 %v34_v34 }
  0x7f   :  { %v111_v36 = vpop.permute.xlu0 %110 }
  0xc3   :  { %v84_v39 = vpop.f32.mrf.mxu0 }
  0xc4   :  { %v104_v40 = vpop.f32.mrf.mxu1  ;;  %v113_v41 = vmul.f32 %v111_v36, %v84_v39 }
  0xc5   :  { %v114_v42 = vmul.f32 %v111_v36, %v104_v40 }
  0xc6   :  { %v121_v43 = vmul.f32 %v117_v37, %v113_v41 }
  0xc7   :  { %v122_v44 = vmul.f32 %v118_v38, %v114_v42 }
  0xc8   :  { %123 = vst [vmem:[#allocation5] sm:$0xff] %v121_v43 }
  0xc9   :  { %124 = vst [vmem:[#allocation5 + $0x8] sm:$0xff] %v122_v44 }
  0xca   :  { %135 = dma.vmem_to_hbm [thread:$0]  %s131_s27, 256, %s133_s30, [#allocation4]  }
  0xcb   :  { %198 = dma.done.wait [#allocation4], 256  }
  0xcc   :  { %199 = vsyncadd [#allocation4], 4294967040 }
  0xcd   :  { %140 = vsyncpa [#allocation3], 1 }
  0xce   :  { %141 = vsyncpa [#allocation4], 1 }

</bundles_post_ra>
